<compile_context>
chip_gen: v7x
topology: tpu7x:2x2x1
jax: 0.10.0
libtpu: 0.0.40
codegen_flags: <defaults>
</compile_context>

<pallas_src>
import functools

import jax
import jax.numpy as jnp
from jax.experimental import pallas as pl
from jax.experimental.pallas import tpu as pltpu

EPS = 1e-5          # nn.BatchNorm1d default eps
OUT_LANES = 128     # lane-dense output slab width


def _round_up(n, m):
    return ((n + m - 1) // m) * m


def _critic_kernel(xa_ref, w_ref, v_ref, out_ref, *, RO_1, LP):
    """One independent minibatch per grid step.

    xa_ref : [B, RO_1]   x | action | zero-pad, lane-concatenated by the wrapper
    w_ref  : [RW, LP]    rows 0:RO_1 = merged layer-0 weight, RO_1:RO_1+LP = layer-1
    v_ref  : [8, LP]     rows: b1, g1, be1, b2, g2, be2, wf_row, (bf at [7, 0])
    out_ref: [B, 128]    q broadcast across lanes (wrapper keeps lane 0)
    """
    B = xa_ref.shape[0]
    inv_b = 1.0 / float(B)

    xa = xa_ref[...]
    v = v_ref[...]                       # single full-tile load, sliced in-register
    b1, g1, be1 = v[0:1, :], v[1:2, :], v[2:3, :]
    b2, g2, be2 = v[3:4, :], v[4:5, :], v[5:6, :]
    wf_row = v[6:7, :]
    bf = v[7:8, 0:1]

    # ---- layer 0: ONE fused matmul (torch.cat folded into xa / wpack layout) -------
    h = jnp.dot(xa, w_ref[0:RO_1, :], preferred_element_type=jnp.float32) + b1
    m = jnp.sum(h, axis=0, keepdims=True) * inv_b
    var = jnp.sum(h * h, axis=0, keepdims=True) * inv_b - m * m   # biased batch var
    scale = g1 * jax.lax.rsqrt(var + EPS)
    h = jnp.tanh(h * scale + (be1 - m * scale))

    # ---- layer 1: Linear + BN + tanh ------------------------------------------------
    h = jnp.dot(h, w_ref[RO_1:RO_1 + LP, :], preferred_element_type=jnp.float32) + b2
    m = jnp.sum(h, axis=0, keepdims=True) * inv_b
    var = jnp.sum(h * h, axis=0, keepdims=True) * inv_b - m * m
    scale = g2 * jax.lax.rsqrt(var + EPS)
    h = jnp.tanh(h * scale + (be2 - m * scale))

    # ---- final Linear as a lane reduce (padded lanes of wf_row are exactly zero) ----
    q = jnp.sum(h * wf_row, axis=-1, keepdims=True) + bf          # [B, 1]
    out_ref[...] = jnp.broadcast_to(q, out_ref.shape)             # lane-dense store


def sequential_critic_forward(x, action, packed):
    """x: [B,S] or [N,B,S]; action: [B,A] or [N,B,A].  Returns [B,1] / [N,B,1] f32.

    Each leading chunk is an independent minibatch (its own BatchNorm batch stats),
    i.e. semantically identical to N separate calls of the PyTorch module."""
    single = (x.ndim == 2)
    if single:
        x, action = x[None], action[None]
    x = x.astype(jnp.float32)
    action = action.astype(jnp.float32)
    N, B, S = x.shape
    A = action.shape[-1]
    wpack, vpack = packed["wpack"], packed["vpack"]
    LP, RO_1 = packed["LP"], packed["RO_1"]
    RW = wpack.shape[0]
    assert S + A <= RO_1 and vpack.shape == (8, LP)

    # Lane-concat x | action | zero-pad so xa's columns match wpack's row layout.
    pad = RO_1 - (S + A)
    parts = [x, action]
    if pad:
        parts.append(jnp.zeros((N, B, pad), jnp.float32))
    xa = jnp.concatenate(parts, axis=-1)                          # [N, B, RO_1]

    kernel = functools.partial(_critic_kernel, RO_1=RO_1, LP=LP)

    # Advisory cost estimate (bytes use 128-lane-padded sizes actually moved).
    lane = 128
    flops = N * (2 * B * LP * (RO_1 + LP) + 14 * B * LP)
    transcendentals = N * (2 * B * LP + 2 * LP)
    bytes_accessed = 4 * (N * B * _round_up(RO_1, lane)           # xa
                          + RW * _round_up(LP, lane)              # wpack (resident)
                          + 8 * _round_up(LP, lane)               # vpack (resident)
                          + N * B * OUT_LANES)                    # out slab

    # VMEM budget: xa/out blocks double-buffered + resident params + headroom,
    # floored at 32 MiB and capped at the v7x 64 MiB physical ceiling.
    block_bytes = 4 * B * lane
    vmem_bytes = 4 * block_bytes + 4 * (RW + 8) * lane + 8 * block_bytes + (1 << 20)
    vmem_limit = int(min(max(vmem_bytes, 32 << 20), 64 << 20))

    out = pl.pallas_call(
        kernel,
        out_shape=jax.ShapeDtypeStruct((N, B, OUT_LANES), jnp.float32),
        grid=(N,),
        in_specs=[
            pl.BlockSpec((None, B, RO_1), lambda i: (i, 0, 0)),   # per-chunk activations
            pl.BlockSpec((RW, LP), lambda i: (0, 0)),             # params: VMEM-resident
            pl.BlockSpec((8, LP), lambda i: (0, 0)),              # params: VMEM-resident
        ],
        out_specs=pl.BlockSpec((None, B, OUT_LANES), lambda i: (i, 0, 0)),
        compiler_params=pltpu.CompilerParams(
            dimension_semantics=("parallel",),
            vmem_limit_bytes=vmem_limit),
        cost_estimate=pl.CostEstimate(flops=flops,
                                      transcendentals=transcendentals,
                                      bytes_accessed=bytes_accessed),
    )(xa, wpack, vpack)

    out = out[..., :1]            # keep lane 0 of the lane-dense slab -> [N, B, 1]
    return out[0] if single else out


def init_params(key, state_size, action_size, layers=(10, 5)):
    """PyTorch-default init: Linear W,b ~ U(-1/sqrt(fan_in), +); BN gamma=1, beta=0.
    First-layer weight stored split as w1s [S, L1] / w1a [A, L1] (mergeLayer=0)."""
    L1, L2 = layers
    k = jax.random.split(key, 6)
    p = {}
    fan1 = state_size + action_size
    b = 1.0 / fan1 ** 0.5
    w1 = jax.random.uniform(k[0], (fan1, L1), jnp.float32, -b, b)
    p["w1s"], p["w1a"] = w1[:state_size], w1[state_size:]
    p["b1"] = jax.random.uniform(k[1], (1, L1), jnp.float32, -b, b)
    b = 1.0 / L1 ** 0.5
    p["w2"] = jax.random.uniform(k[2], (L1, L2), jnp.float32, -b, b)
    p["b2"] = jax.random.uniform(k[3], (1, L2), jnp.float32, -b, b)
    b = 1.0 / L2 ** 0.5
    p["wf"] = jax.random.uniform(k[4], (L2, 1), jnp.float32, -b, b)
    p["bf"] = jax.random.uniform(k[5], (1, 1), jnp.float32, -b, b)
    p["g1"], p["be1"] = jnp.ones((1, L1), jnp.float32), jnp.zeros((1, L1), jnp.float32)
    p["g2"], p["be2"] = jnp.ones((1, L2), jnp.float32), jnp.zeros((1, L2), jnp.float32)
    return p


def pack_params(p, state_size, action_size, layers=(10, 5)):
    """Pack all parameters into two small f32 arrays.

    wpack rows: [0:S)=w1_state, [S:S+A)=w1_action (so ONE matmul against the
    lane-concatenated xa reproduces Linear(cat(x, action))), [RO_1:RO_1+L1)=w2.
    Lanes padded to LP=max(L1,L2).  NOTE: padded rows/lanes of wpack AND vpack must
    stay exactly zero — zero gamma/beta/bias pads keep padded lanes at tanh(0)=0
    through both BN layers, so they contribute nothing to the final lane reduce.
    vpack rows: b1, g1, be1, b2, g2, be2, wf_row, bf(at [7,0])."""
    S, A = state_size, action_size
    L1, L2 = layers
    LP = max(L1, L2)
    RO_1 = _round_up(S + A, 8)
    RW = RO_1 + _round_up(LP, 8)

    wpack = jnp.zeros((RW, LP), jnp.float32)
    wpack = wpack.at[0:S, 0:L1].set(p["w1s"])
    wpack = wpack.at[S:S + A, 0:L1].set(p["w1a"])
    wpack = wpack.at[RO_1:RO_1 + L1, 0:L2].set(p["w2"])

    vpack = jnp.zeros((8, LP), jnp.float32)
    vpack = vpack.at[0:1, 0:L1].set(p["b1"])
    vpack = vpack.at[1:2, 0:L1].set(p["g1"])
    vpack = vpack.at[2:3, 0:L1].set(p["be1"])
    vpack = vpack.at[3:4, 0:L2].set(p["b2"])
    vpack = vpack.at[4:5, 0:L2].set(p["g2"])
    vpack = vpack.at[5:6, 0:L2].set(p["be2"])
    vpack = vpack.at[6:7, 0:L2].set(p["wf"].T)
    vpack = vpack.at[7, 0].set(p["bf"][0, 0])

    return {"wpack": wpack, "vpack": vpack, "L1": L1, "L2": L2, "LP": LP, "RO_1": RO_1}


def _reference(x, action, p):
    """Pure-JAX reference of the same forward pass (training-mode BatchNorm)."""
    h = x @ p["w1s"] + action @ p["w1a"] + p["b1"]
    m = jnp.mean(h, 0, keepdims=True)
    v = jnp.mean((h - m) ** 2, 0, keepdims=True)
    h = jnp.tanh((h - m) / jnp.sqrt(v + EPS) * p["g1"] + p["be1"])
    h = h @ p["w2"] + p["b2"]
    m = jnp.mean(h, 0, keepdims=True)
    v = jnp.mean((h - m) ** 2, 0, keepdims=True)
    h = jnp.tanh((h - m) / jnp.sqrt(v + EPS) * p["g2"] + p["be2"])
    return h @ p["wf"] + p["bf"]


if __name__ == "__main__":
    STATE_SIZE, ACTION_SIZE, BATCH, N_CHUNKS = 16, 4, 8, 4
    LAYERS = (10, 5)

    key = jax.random.PRNGKey(0)
    kx, ka, kp, ksx, ksa = jax.random.split(key, 5)
    params = init_params(kp, STATE_SIZE, ACTION_SIZE, LAYERS)
    packed = pack_params(params, STATE_SIZE, ACTION_SIZE, LAYERS)

    # --- single minibatch --------------------------------------------------------
    x = jax.random.normal(kx, (BATCH, STATE_SIZE), jnp.float32)
    action = jax.random.normal(ka, (BATCH, ACTION_SIZE), jnp.float32)
    out = jax.block_until_ready(sequential_critic_forward(x, action, packed))
    ref = _reference(x, action, params)
    assert out.shape == (BATCH, 1)
    assert jnp.allclose(out, ref, rtol=1e-4, atol=1e-4), "single-batch mismatch"

    # --- stacked independent minibatches (grid path, one grid step per chunk) -----
    xs = jax.random.normal(ksx, (N_CHUNKS, BATCH, STATE_SIZE), jnp.float32)
    acts = jax.random.normal(ksa, (N_CHUNKS, BATCH, ACTION_SIZE), jnp.float32)
    outs = jax.block_until_ready(sequential_critic_forward(xs, acts, packed))
    refs = jax.vmap(_reference, in_axes=(0, 0, None))(xs, acts, params)
    assert outs.shape == (N_CHUNKS, BATCH, 1)
    assert jnp.allclose(outs, refs, rtol=1e-4, atol=1e-4), "stacked-batch mismatch"

    print("KERNEL_OK")
</pallas_src>

<mosaic_0001>
module attributes {stable_mosaic.version = 11 : i64} {
  func.func @_critic_kernel(%arg0: i32, %arg1: memref<1x8x24xf32, #tpu.memory_space<vmem>>, %arg2: memref<40x10xf32, #tpu.memory_space<vmem>>, %arg3: memref<8x10xf32, #tpu.memory_space<vmem>>, %arg4: memref<1x8x128xf32, #tpu.memory_space<vmem>>) attributes {dimension_semantics = [#tpu.dimension_semantics<parallel>], iteration_bounds = array<i64: 1>, scalar_prefetch = 0 : i64, scratch_operands = 0 : i64, tpu.core_type = #tpu.core_type<tc>, window_params = [{transform_indices = @transform_0, window_bounds = array<i64: 1, 8, 24>}, {pipeline_mode = #tpu.pipeline_mode<synchronous>, transform_indices = @transform_1, window_bounds = array<i64: 40, 10>}, {pipeline_mode = #tpu.pipeline_mode<synchronous>, transform_indices = @transform_2, window_bounds = array<i64: 8, 10>}, {transform_indices = @transform_3, window_bounds = array<i64: 1, 8, 128>}]} {
    %c0 = arith.constant 0 : index
    %c0_0 = arith.constant 0 : index
    %c0_1 = arith.constant 0 : index
    %0 = vector.load %arg1[%c0, %c0_0, %c0_1] : memref<1x8x24xf32, #tpu.memory_space<vmem>>, vector<1x8x24xf32>
    %1 = vector.shape_cast %0 : vector<1x8x24xf32> to vector<8x24xf32>
    %c0_2 = arith.constant 0 : index
    %c0_3 = arith.constant 0 : index
    %2 = vector.load %arg3[%c0_2, %c0_3] : memref<8x10xf32, #tpu.memory_space<vmem>>, vector<8x10xf32>
    %3 = vector.extract_strided_slice %2 {offsets = [0, 0], sizes = [1, 10], strides = [1, 1]} : vector<8x10xf32> to vector<1x10xf32>
    %4 = vector.extract_strided_slice %2 {offsets = [1, 0], sizes = [1, 10], strides = [1, 1]} : vector<8x10xf32> to vector<1x10xf32>
    %5 = vector.extract_strided_slice %2 {offsets = [2, 0], sizes = [1, 10], strides = [1, 1]} : vector<8x10xf32> to vector<1x10xf32>
    %6 = vector.extract_strided_slice %2 {offsets = [3, 0], sizes = [1, 10], strides = [1, 1]} : vector<8x10xf32> to vector<1x10xf32>
    %7 = vector.extract_strided_slice %2 {offsets = [4, 0], sizes = [1, 10], strides = [1, 1]} : vector<8x10xf32> to vector<1x10xf32>
    %8 = vector.extract_strided_slice %2 {offsets = [5, 0], sizes = [1, 10], strides = [1, 1]} : vector<8x10xf32> to vector<1x10xf32>
    %9 = vector.extract_strided_slice %2 {offsets = [6, 0], sizes = [1, 10], strides = [1, 1]} : vector<8x10xf32> to vector<1x10xf32>
    %10 = vector.extract_strided_slice %2 {offsets = [7, 0], sizes = [1, 1], strides = [1, 1]} : vector<8x10xf32> to vector<1x1xf32>
    %c0_4 = arith.constant 0 : index
    %c0_5 = arith.constant 0 : index
    %11 = vector.load %arg2[%c0_4, %c0_5] : memref<40x10xf32, #tpu.memory_space<vmem>>, vector<24x10xf32>
    %cst = arith.constant dense<0.000000e+00> : vector<8x10xf32>
    %12 = tpu.matmul %1, %11, %cst {dimension_numbers = #tpu.dot_dimension_numbers<[1], [0], [0], [1], [0, 0, 1, 1], [], []>} : vector<8x24xf32>, vector<24x10xf32>, vector<8x10xf32> -> vector<8x10xf32>
    %13 = vector.broadcast %3 : vector<1x10xf32> to vector<8x10xf32>
    %14 = arith.addf %12, %13 : vector<8x10xf32>
    %cst_6 = arith.constant dense<0.000000e+00> : vector<10xf32>
    %15 = vector.multi_reduction <add>, %14, %cst_6 [0] : vector<8x10xf32> to vector<10xf32>
    %16 = vector.shape_cast %15 : vector<10xf32> to vector<1x10xf32>
    %cst_7 = arith.constant 1.250000e-01 : f32
    %17 = vector.broadcast %cst_7 : f32 to vector<1x10xf32>
    %18 = arith.mulf %16, %17 : vector<1x10xf32>
    %19 = arith.mulf %14, %14 : vector<8x10xf32>
    %cst_8 = arith.constant dense<0.000000e+00> : vector<10xf32>
    %20 = vector.multi_reduction <add>, %19, %cst_8 [0] : vector<8x10xf32> to vector<10xf32>
    %21 = vector.shape_cast %20 : vector<10xf32> to vector<1x10xf32>
    %cst_9 = arith.constant 1.250000e-01 : f32
    %22 = vector.broadcast %cst_9 : f32 to vector<1x10xf32>
    %23 = arith.mulf %21, %22 : vector<1x10xf32>
    %24 = arith.mulf %18, %18 : vector<1x10xf32>
    %25 = arith.subf %23, %24 : vector<1x10xf32>
    %cst_10 = arith.constant 9.99999974E-6 : f32
    %26 = vector.broadcast %cst_10 : f32 to vector<1x10xf32>
    %27 = arith.addf %25, %26 : vector<1x10xf32>
    %28 = math.rsqrt %27 : vector<1x10xf32>
    %29 = arith.mulf %4, %28 : vector<1x10xf32>
    %30 = vector.broadcast %29 : vector<1x10xf32> to vector<8x10xf32>
    %31 = arith.mulf %14, %30 : vector<8x10xf32>
    %32 = arith.mulf %18, %29 : vector<1x10xf32>
    %33 = arith.subf %5, %32 : vector<1x10xf32>
    %34 = vector.broadcast %33 : vector<1x10xf32> to vector<8x10xf32>
    %35 = arith.addf %31, %34 : vector<8x10xf32>
    %36 = math.tanh %35 : vector<8x10xf32>
    %c24 = arith.constant 24 : index
    %c0_11 = arith.constant 0 : index
    %37 = vector.load %arg2[%c24, %c0_11] : memref<40x10xf32, #tpu.memory_space<vmem>>, vector<10x10xf32>
    %cst_12 = arith.constant dense<0.000000e+00> : vector<8x10xf32>
    %38 = tpu.matmul %36, %37, %cst_12 {dimension_numbers = #tpu.dot_dimension_numbers<[1], [0], [0], [1], [0, 0, 1, 1], [], []>} : vector<8x10xf32>, vector<10x10xf32>, vector<8x10xf32> -> vector<8x10xf32>
    %39 = vector.broadcast %6 : vector<1x10xf32> to vector<8x10xf32>
    %40 = arith.addf %38, %39 : vector<8x10xf32>
    %cst_13 = arith.constant dense<0.000000e+00> : vector<10xf32>
    %41 = vector.multi_reduction <add>, %40, %cst_13 [0] : vector<8x10xf32> to vector<10xf32>
    %42 = vector.shape_cast %41 : vector<10xf32> to vector<1x10xf32>
    %cst_14 = arith.constant 1.250000e-01 : f32
    %43 = vector.broadcast %cst_14 : f32 to vector<1x10xf32>
    %44 = arith.mulf %42, %43 : vector<1x10xf32>
    %45 = arith.mulf %40, %40 : vector<8x10xf32>
    %cst_15 = arith.constant dense<0.000000e+00> : vector<10xf32>
    %46 = vector.multi_reduction <add>, %45, %cst_15 [0] : vector<8x10xf32> to vector<10xf32>
    %47 = vector.shape_cast %46 : vector<10xf32> to vector<1x10xf32>
    %cst_16 = arith.constant 1.250000e-01 : f32
    %48 = vector.broadcast %cst_16 : f32 to vector<1x10xf32>
    %49 = arith.mulf %47, %48 : vector<1x10xf32>
    %50 = arith.mulf %44, %44 : vector<1x10xf32>
    %51 = arith.subf %49, %50 : vector<1x10xf32>
    %cst_17 = arith.constant 9.99999974E-6 : f32
    %52 = vector.broadcast %cst_17 : f32 to vector<1x10xf32>
    %53 = arith.addf %51, %52 : vector<1x10xf32>
    %54 = math.rsqrt %53 : vector<1x10xf32>
    %55 = arith.mulf %7, %54 : vector<1x10xf32>
    %56 = vector.broadcast %55 : vector<1x10xf32> to vector<8x10xf32>
    %57 = arith.mulf %40, %56 : vector<8x10xf32>
    %58 = arith.mulf %44, %55 : vector<1x10xf32>
    %59 = arith.subf %8, %58 : vector<1x10xf32>
    %60 = vector.broadcast %59 : vector<1x10xf32> to vector<8x10xf32>
    %61 = arith.addf %57, %60 : vector<8x10xf32>
    %62 = math.tanh %61 : vector<8x10xf32>
    %63 = vector.broadcast %9 : vector<1x10xf32> to vector<8x10xf32>
    %64 = arith.mulf %62, %63 : vector<8x10xf32>
    %cst_18 = arith.constant dense<0.000000e+00> : vector<8xf32>
    %65 = vector.multi_reduction <add>, %64, %cst_18 [1] : vector<8x10xf32> to vector<8xf32>
    %66 = vector.shape_cast %65 : vector<8xf32> to vector<8x1xf32>
    %67 = vector.broadcast %10 : vector<1x1xf32> to vector<8x1xf32>
    %68 = arith.addf %66, %67 : vector<8x1xf32>
    %69 = vector.shape_cast %68 : vector<8x1xf32> to vector<8x1xf32>
    %70 = vector.broadcast %69 : vector<8x1xf32> to vector<8x128xf32>
    %c0_19 = arith.constant 0 : index
    %c0_20 = arith.constant 0 : index
    %c0_21 = arith.constant 0 : index
    %71 = vector.load %arg4[%c0_19, %c0_20, %c0_21] : memref<1x8x128xf32, #tpu.memory_space<vmem>>, vector<1x8x128xf32>
    %72 = vector.shape_cast %71 : vector<1x8x128xf32> to vector<8x128xf32>
    %73 = vector.shape_cast %70 : vector<8x128xf32> to vector<1x8x128xf32>
    tpu.vector_store %arg4[%c0_19, %c0_20, %c0_21], %73 {strides = array<i32>} : memref<1x8x128xf32, #tpu.memory_space<vmem>>, vector<1x8x128xf32>,
    return
  }
  func.func @transform_0(%arg0: i32) -> (i32, i32, i32) {
    %c0_i32 = arith.constant 0 : i32
    %c0_i32_0 = arith.constant 0 : i32
    %c0_i32_1 = arith.constant 0 : i32
    return %arg0, %c0_i32, %c0_i32_0 : i32, i32, i32
  }
  func.func @transform_1(%arg0: i32) -> (i32, i32) {
    %c0_i32 = arith.constant 0 : i32
    %c0_i32_0 = arith.constant 0 : i32
    %c0_i32_1 = arith.constant 0 : i32
    return %c0_i32, %c0_i32_0 : i32, i32
  }
  func.func @transform_2(%arg0: i32) -> (i32, i32) {
    %c0_i32 = arith.constant 0 : i32
    %c0_i32_0 = arith.constant 0 : i32
    %c0_i32_1 = arith.constant 0 : i32
    return %c0_i32, %c0_i32_0 : i32, i32
  }
  func.func @transform_3(%arg0: i32) -> (i32, i32, i32) {
    %c0_i32 = arith.constant 0 : i32
    %c0_i32_0 = arith.constant 0 : i32
    %c0_i32_1 = arith.constant 0 : i32
    return %arg0, %c0_i32, %c0_i32_0 : i32, i32, i32
  }
}

</mosaic_0001>

<bundles_post_ra>
// kernel: tpu_custom_call.1
= control target key start
LH: loop header
LB: loop body
LE: loop exit
PB: predicated region body
PF: predicated region fallthrough
CT: control target
= control target key end

     0   :  { %v363_v2 = vmov 0.0|0.0   ;;  %vm364_vm0 = vmmov 0   ;;  %v365_v4 = vmov 0.0   ;;  %s448_s0 = inlined_call_operand.vmem [shape: f32[1,8,24], index: 0, kind: input, shape index: {}]   ;;  %s449_s1 = inlined_call_operand.vmem [shape: f32[40,10], index: 1, kind: input, shape index: {}]   ;;  %s450_s2 = inlined_call_operand.vmem [shape: f32[8,10], index: 2, kind: input, shape index: {}]   ;;  %s451_s3 = inlined_call_operand.hbm [shape: f32[1,8,128], index: 3, kind: output, shape index: {}]  }
   0x1   :  { %v17_v0 = vld [vmem:[%s449_s1] sm:$0xff]  ;;  %v18_v1 = vld [vmem:[%s449_s1 + $0x8] sm:$0xff]  ;;  %317 = vmatprep.subr.bf16.mxu0 %v363_v2  ;;  %307 = vmatprep.mubr.msk.f32.mxu0 %vm364_vm0, %v365_v4 }
   0x2   :  { %v318_v3 = vpack.c.bf16 %v18_v1, %v17_v0 }
   0x3   :  { %8 = vsyncpa [#allocation3], 0  ;;  %320 = vmatprep.subr.bf16.mxu1 %v363_v2  ;;  %314 = vmatprep.mubr.msk.f32.mxu1 %vm364_vm0, %v365_v4  ;;  %v19_v5 = vld [vmem:[%s449_s1 + $0x10] sm:$0xff]  ;;  %v15_v6 = vld [vmem:[%s448_s0] sm:$0xff]  ;;  %vm24_vm1 = vcmask 195584   ;;  %vm146_vm2 = vcmask 1041408   ;;  %v20_v10 = vlaneseq }
   0x4   :  { %319 = vmatpush3.bf16.msra.mxu0 %v318_v3  ;;  %v137_v7 = vld [vmem:[%s449_s1 + $0x18] sm:$0xff]  ;;  %v138_v8 = vld [vmem:[%s449_s1 + $0x20] sm:$0x3]  ;;  %vm366_vm3 = vmmov 1   ;;  %vm98_vm5 = vcmask 80896   ;;  %s368_s1 = smov [#allocation2]  }
   0x5   :  { %305 = vmatprep.subr.mxu0 %v365_v4  ;;  %v321_v9 = vpack.c.bf16 %v138_v8, %v137_v7  ;;  %vm322_vm4 = vmpackc.low %vm146_vm2, %vm366_vm3  ;;  %v407_v11 = vshrl.u32 %v20_v10, 7  ;;  %v413_v13 = vld [vmem:[%s450_s2] sm:$0xff]  ;;  %s283_s2 = sshll.u32 %s368_s1, 4  ;;  %s284_s2 = int_to_ptr.vmem [resolvable:$true] %s283_s2 }
   0x6   :  { %s339_s25 = scalar_lea.vmem %s284_s2, 128  ;;  %p344_p1 = scmp.lt.s32.totalorder %s284_s2, %s284_s2 }
   0x7   :  { %323 = vmatpush3.bf16.msk.msra.mxu1 %vm322_vm4, %v321_v9  ;;  %v22_v12 = vsub.s32 0, %v407_v11  ;;  %v123_v40 = vsub.s32 1, %v407_v11  ;;  %v133_v44 = vsub.s32 2, %v407_v11  ;;  %v141_v50 = vsub.s32 3, %v407_v11  ;;  %p340_p0 = scmp.ne.s32.totalorder %s284_s2, %s339_s25  ;;  %p345_p2 = scmp.lt.s32.totalorder %s339_s25, %s339_s25 }
   0x8   :  { %306 = vmatpush3.msra.mxu0 %v19_v5 }
   0x9   :  { %308 = vmatmul.mubr.msk.f32.vlgmr.msra.gmra.mrb[0].mxu0 %vm24_vm1, %v15_v6  ;;  %v23_v14 = vrot.slane %v413_v13, %v22_v12  ;;  %v142_v51 = vrot.slane %v413_v13, %v141_v50  ;;  %p346_p3 = por %p345_p2, %p344_p1 }
   0xb   :  { %p347_p4 = pnand %p346_p3, %p340_p0 }
  0xdc   :  { %v94_v15 = vpop.f32.mrb[0].mxu0 }
  0xdd   :  { %v95_v16 = vadd.f32 %v94_v15, %v23_v14  ;;  %v309_v17 = vpop.f32.mrb[1].mxu0  ;;  %v244_v15 = vsub.s32 4, %v407_v11 }
  0xdf   :  { %v99_v18 = vsel %vm98_vm5, %v95_v16, 0.0  ;;  %v107_v19 = vmul.f32 %v95_v16, %v95_v16 }
  0xe0   :  { %v100_v20 = vrot.slane %v99_v18, 4 }
  0xe1   :  { %v108_v21 = vsel %vm98_vm5, %v107_v19, 0.0  ;;  %v254_v19 = vsub.s32 5, %v407_v11 }
  0xe2   :  { %v101_v22 = vadd.f32 %v100_v20, %v99_v18  ;;  %v109_v23 = vrot.slane %v108_v21, 4 }
  0xe4   :  { %v102_v24 = vrot.slane %v101_v22, 2  ;;  %v110_v25 = vadd.f32 %v109_v23, %v108_v21 }
  0xe6   :  { %v103_v26 = vadd.f32 %v102_v24, %v101_v22  ;;  %v111_v27 = vrot.slane %v110_v25, 2  ;;  %v260_v24 = vsub.s32 6, %v407_v11 }
  0xe8   :  { %v104_v28 = vrot.slane %v103_v26, 1  ;;  %v112_v29 = vadd.f32 %v111_v27, %v110_v25  ;;  %v261_v25 = vrot.slane %v413_v13, %v260_v24 }
  0xea   :  { %v105_v30 = vadd.f32 %v104_v28, %v103_v26  ;;  %v113_v31 = vrot.slane %v112_v29, 1 }
  0xec   :  { %v106_v32 = vmul.f32 0.125, %v105_v30  ;;  %v114_v33 = vadd.f32 %v113_v31, %v112_v29  ;;  %v367_v29 = vmov 0   ;;  %v268_v30 = vsub.s32 7, %v407_v11 }
  0xed   :  { %330 = vset.pattern.permute.xlu0 %v367_v29 }
  0xee   :  { %v115_v34 = vmul.f32 0.125, %v114_v33  ;;  %v116_v35 = vmul.f32 %v106_v32, %v106_v32  ;;  %v269_v31 = vrot.slane %v413_v13, %v268_v30 }
  0xf0   :  { %v117_v36 = vsub.f32 %v115_v34, %v116_v35 }
  0xf2   :  { %v118_v37 = vadd.f32 1e-05, %v117_v36 }
  0xf4   :  { %331 = vrsqrt.f32 %v118_v37 }
  0xfe   :  { %v332_v38 = vpop.eup %331 }
  0xff   :  { %v120_v39 = vmul.f32 %v332_v38, %v413_v13 }
 0x101   :  { %v126_v41 = vmul.f32 %v120_v39, %v106_v32  ;;  %v124_v42 = vrot.slane %v120_v39, %v123_v40 }
 0x103   :  { %v128_v43 = vrot.slane %v126_v41, 7  ;;  %v125_v46 = vmul.f32 %v124_v42, %v95_v16 }
 0x105   :  { %v130_v45 = vsub.f32 %v413_v13, %v128_v43 }
 0x107   :  { %v134_v47 = vrot.slane %v130_v45, %v133_v44 }
 0x109   :  { %v135_v48 = vadd.f32 %v134_v47, %v125_v46 }
 0x10b   :  { %333 = vtanh.f32 %v135_v48 }
 0x115   :  { %v334_v49 = vpop.eup %333 }
 0x116   :  { %315 = vmatmul.mubr.msk.f32.vlgmr.msra.gmra.mrb[0].mxu1 %vm98_vm5, %v334_v49 }
 0x1e9   :  { %v216_v52 = vpop.f32.mrb[0].mxu1 }
 0x1ea   :  { %v217_v53 = vadd.f32 %v216_v52, %v142_v51  ;;  %v316_v54 = vpop.f32.mrb[1].mxu1 }
 0x1ec   :  { %v220_v55 = vsel %vm98_vm5, %v217_v53, 0.0  ;;  %v228_v56 = vmul.f32 %v217_v53, %v217_v53 }
 0x1ed   :  { %v221_v57 = vrot.slane %v220_v55, 4 }
 0x1ee   :  { %v229_v58 = vsel %vm98_vm5, %v228_v56, 0.0 }
 0x1ef   :  { %v222_v59 = vadd.f32 %v221_v57, %v220_v55  ;;  %v230_v60 = vrot.slane %v229_v58, 4 }
 0x1f1   :  { %v223_v61 = vrot.slane %v222_v59, 2  ;;  %v231_v62 = vadd.f32 %v230_v60, %v229_v58 }
 0x1f3   :  { %v224_v63 = vadd.f32 %v223_v61, %v222_v59  ;;  %v232_v0 = vrot.slane %v231_v62, 2 }
 0x1f5   :  { %v225_v1 = vrot.slane %v224_v63, 1  ;;  %v233_v2 = vadd.f32 %v232_v0, %v231_v62 }
 0x1f7   :  { %v226_v3 = vadd.f32 %v225_v1, %v224_v63  ;;  %v234_v4 = vrot.slane %v233_v2, 1 }
 0x1f9   :  { %v227_v5 = vmul.f32 0.125, %v226_v3  ;;  %v235_v6 = vadd.f32 %v234_v4, %v233_v2 }
 0x1fb   :  { %v236_v7 = vmul.f32 0.125, %v235_v6  ;;  %v237_v8 = vmul.f32 %v227_v5, %v227_v5 }
 0x1fd   :  { %v238_v9 = vsub.f32 %v236_v7, %v237_v8 }
 0x1ff   :  { %v239_v10 = vadd.f32 1e-05, %v238_v9 }
 0x201   :  { %335 = vrsqrt.f32 %v239_v10 }
 0x20b   :  { %v336_v12 = vpop.eup %335 }
 0x20c   :  { %v241_v14 = vmul.f32 %v336_v12, %v413_v13 }
 0x20e   :  { %v247_v16 = vmul.f32 %v241_v14, %v227_v5  ;;  %v245_v17 = vrot.slane %v241_v14, %v244_v15 }
 0x210   :  { %v249_v18 = vrot.slane %v247_v16, 7  ;;  %v246_v21 = vmul.f32 %v245_v17, %v217_v53 }
 0x212   :  { %v251_v20 = vsub.f32 %v413_v13, %v249_v18 }
 0x214   :  { %v255_v22 = vrot.slane %v251_v20, %v254_v19 }
 0x216   :  { %v256_v23 = vadd.f32 %v255_v22, %v246_v21 }
 0x218   :  { %337 = vtanh.f32 %v256_v23 }
 0x222   :  { %v338_v26 = vpop.eup %337 }
 0x223   :  { %v262_v27 = vmul.f32 %v338_v26, %v261_v25 }
 0x225   :  { %v263_v28 = vsel %vm98_vm5, %v262_v27, 0.0 }
 0x226   :  { %264 = vadd.xlane.f32.xlu0 %v263_v28 }
 0x2b3   :  { %v265_v32 = vpop.xlane.xlu0 %264 }
 0x2b4   :  { %v270_v33 = vadd.f32 %v269_v31, %v265_v32 }
 0x2b6   :  { %273 = vperm.xlu0 %330, %v270_v33  }
 0x335   :  { %v274_v34 = vpop.permute.xlu0 %273 }
 0x336   :  { %276 = vst [vmem:[#allocation2] sm:$0xff] %v274_v34 }
 0x337   :  { %350 = shalt.err (!%p347_p4)
}
 0x338   :  { %s351_s28 = scalar_lea.hbm %s451_s3, 128 }
 0x339   :  { %p352_p5 = scmp.ne.s32.totalorder %s451_s3, %s351_s28  ;;  %p355_p6 = scmp.lt.u32.totalorder %s351_s28, %s451_s3 }
 0x33b   :  { %p357_p7 = pnand %p355_p6, %p352_p5 }
 0x33d   :  { %360 = shalt.err (!%p357_p7)
}
 0x33e   :  { %286 = dma.vmem_to_hbm [thread:$0]  %s284_s2, 128, %s451_s3, [#allocation3]  }
 0x33f   :  { %361 = dma.done.wait [#allocation3], 128  }
 0x340   :  { %362 = vsyncadd [#allocation3], 4294967168 }
 0x341   :  { %290 = vsyncpa [#allocation3], 1 }

</bundles_post_ra>
